<compile_context>
chip_gen: v7x
topology: tpu7x:2x2x1
jax: 0.10.0
libtpu: 0.0.40
codegen_flags: <defaults>
</compile_context>

<pallas_src>
import jax
import jax.numpy as jnp
from jax import lax
from jax.experimental import pallas as pl
from jax.experimental.pallas import tpu as pltpu

EPS = 1e-5
VMEM_LIMIT = 64 * 1024 * 1024  # scoped VMEM limit (safe on v5e/v6e, == physical on v7x)


def _cparams(dims):
    return pltpu.CompilerParams(dimension_semantics=dims,
                                vmem_limit_bytes=VMEM_LIMIT)


def _round_up(x, m):
    return (x + m - 1) // m * m


def _pick_row_tile(L, target):
    # tile the L_i axis when it divides evenly, otherwise fall back to the full dim
    if L >= target and L % target == 0:
        return target
    return L


# ----------------------------------------------------------------------------
# Kernel 1: layer_norm_MSA -> proj_1D_left Linear -> LayerNorm(n_emb_1D), fused.
# Rows = B*N*L, processed in large row tiles.
# ----------------------------------------------------------------------------
def ln_linear_ln_kernel(x_ref, g1_ref, b1_ref, w_ref, b_ref, g2_ref, b2_ref, o_ref):
    x = x_ref[...].astype(jnp.float32)                               # (TM, D)
    mu = jnp.mean(x, axis=-1, keepdims=True)
    var = jnp.mean((x - mu) ** 2, axis=-1, keepdims=True)
    xn = (x - mu) * lax.rsqrt(var + EPS)
    xn = xn * g1_ref[...] + b1_ref[...]
    y = jnp.dot(xn.astype(jnp.bfloat16), w_ref[...].astype(jnp.bfloat16),
                preferred_element_type=jnp.float32) + b_ref[...]     # (TM, E1)
    mu2 = jnp.mean(y, axis=-1, keepdims=True)
    var2 = jnp.mean((y - mu2) ** 2, axis=-1, keepdims=True)
    yn = (y - mu2) * lax.rsqrt(var2 + EPS)
    o_ref[...] = (yn * g2_ref[...] + b2_ref[...]).astype(o_ref.dtype)


def ln_linear_ln(x_flat, g1, b1, w, b, g2, b2, row_tile=512):
    R, D = x_flat.shape
    E = w.shape[1]
    tm = min(row_tile, _round_up(R, 8))
    Rp = _round_up(R, tm)
    if Rp != R:
        x_flat = jnp.pad(x_flat, ((0, Rp - R), (0, 0)))
    out = pl.pallas_call(
        ln_linear_ln_kernel,
        out_shape=jax.ShapeDtypeStruct((Rp, E), x_flat.dtype),
        grid=(Rp // tm,),
        in_specs=[
            pl.BlockSpec((tm, D), lambda i: (i, 0)),
            pl.BlockSpec((1, D), lambda i: (0, 0)),
            pl.BlockSpec((1, D), lambda i: (0, 0)),
            pl.BlockSpec((D, E), lambda i: (0, 0)),
            pl.BlockSpec((1, E), lambda i: (0, 0)),
            pl.BlockSpec((1, E), lambda i: (0, 0)),
            pl.BlockSpec((1, E), lambda i: (0, 0)),
        ],
        out_specs=pl.BlockSpec((tm, E), lambda i: (i, 0)),
        compiler_params=_cparams(("parallel",)),
    )(x_flat, g1, b1, w, b, g2, b2)
    return out[:R] if Rp != R else out


# ----------------------------------------------------------------------------
# Kernel 2: CovLayer — weighted outer product einsum('bnil,bnjr->bijlr') fused with
# the (E1*E1 -> E2) projection and norm_pair1 LayerNorm.  Row-tiled over L_i; the
# L*L*E1*E1 outer product is never materialized; partial sums accumulate into a
# float32 VMEM scratch, matmul operands are bf16.
# ----------------------------------------------------------------------------
def cov_proj_kernel(xlw_ref, xr_ref, w3_ref, pb_ref, g_ref, be_ref, o_ref, acc_ref):
    # xlw_ref: (1, E1, N, TL)  weighted left features (L_i lane-major)
    # xr_ref:  (1, N*L, E1)    right features, rows ordered (n, j)
    # w3_ref:  (E1, E1, E2)    projection weight W3[l, r, e]
    # o_ref:   (1, TL, L, E2)  norm_pair1(proj(outer_product))
    # acc_ref: (TL, L*E2) f32  scratch accumulator
    E1 = xlw_ref.shape[1]
    TL = xlw_ref.shape[3]
    E2 = w3_ref.shape[2]
    L = o_ref.shape[2]
    N = xr_ref.shape[1] // L

    xr = xr_ref[0].astype(jnp.bfloat16)                              # (N*L, E1)
    acc_ref[...] = jnp.zeros_like(acc_ref)
    for l in range(E1):                                              # static loop over left channel
        s = jnp.dot(xr, w3_ref[l].astype(jnp.bfloat16),
                    preferred_element_type=jnp.float32)              # (N*L_j, E2)
        s = s.reshape(N, L * E2).astype(jnp.bfloat16)                # (N, L_j*E2)
        xlw_l = xlw_ref[0, l].astype(jnp.bfloat16)                   # (N, TL_i)
        acc_ref[...] += lax.dot_general(
            xlw_l, s, (((0,), (0,)), ((), ())),
            preferred_element_type=jnp.float32)                      # (TL_i, L_j*E2)

    y = acc_ref[...].reshape(TL * L, E2) + pb_ref[...]               # proj_layer bias
    mu = jnp.mean(y, axis=-1, keepdims=True)                         # norm_pair1 LayerNorm
    var = jnp.mean((y - mu) ** 2, axis=-1, keepdims=True)
    yn = (y - mu) * lax.rsqrt(var + EPS) * g_ref[...] + be_ref[...]
    o_ref[0] = yn.reshape(TL, L, E2).astype(o_ref.dtype)


def cov_proj(xlw_t, xr_flat, w3, pb, g, be, row_tile=128):
    B, E1, N, L = xlw_t.shape
    E2 = w3.shape[-1]
    TL = _pick_row_tile(L, row_tile)
    n_i = L // TL
    return pl.pallas_call(
        cov_proj_kernel,
        out_shape=jax.ShapeDtypeStruct((B, L, L, E2), xr_flat.dtype),
        grid=(B, n_i),
        in_specs=[
            pl.BlockSpec((1, E1, N, TL), lambda b, i: (b, 0, 0, i)),
            pl.BlockSpec((1, N * L, E1), lambda b, i: (b, 0, 0)),
            pl.BlockSpec((E1, E1, E2), lambda b, i: (0, 0, 0)),
            pl.BlockSpec((1, E2), lambda b, i: (0, 0)),
            pl.BlockSpec((1, E2), lambda b, i: (0, 0)),
            pl.BlockSpec((1, E2), lambda b, i: (0, 0)),
        ],
        out_specs=pl.BlockSpec((1, TL, L, E2), lambda b, i: (b, i, 0, 0)),
        scratch_shapes=[pltpu.VMEM((TL, L * E2), jnp.float32)],
        compiler_params=_cparams(("parallel", "parallel")),
    )(xlw_t, xr_flat, w3, pb, g, be)


# ----------------------------------------------------------------------------
# Kernel 3: norm_pair2 (LayerNorm on pair_feat_prev) + channel concat
# [feat_1D_pair(left,right) | norm1(cov) | norm2(prev)] + 1x1 Conv2d (split matmuls),
# row-tiled over L_i.  The InstanceNorm2d of proj_2D is done two-pass: this kernel
# accumulates per-channel sum / sum-of-squares across row tiles, and the normalization
# is folded into the first ResNet block's load.
# ----------------------------------------------------------------------------
def proj2d_kernel(cov_ref, prev_ref, xls_ref, xrs_ref,
                  wl_ref, wr_ref, wc_ref, wp_ref, cb_ref,
                  g2_ref, b2_ref, y_ref, stats_ref):
    i = pl.program_id(1)
    TL = cov_ref.shape[1]
    L = cov_ref.shape[2]
    E2 = cov_ref.shape[3]

    cov = cov_ref[0].reshape(TL * L, E2).astype(jnp.bfloat16)
    prev = prev_ref[0].astype(jnp.float32).reshape(TL * L, E2)

    # norm_pair2 on pair_feat_prev
    mu = jnp.mean(prev, axis=-1, keepdims=True)
    var = jnp.mean((prev - mu) ** 2, axis=-1, keepdims=True)
    prev_n = (prev - mu) * lax.rsqrt(var + EPS) * g2_ref[...] + b2_ref[...]

    aj = jnp.dot(xls_ref[0].astype(jnp.bfloat16), wl_ref[...].astype(jnp.bfloat16),
                 preferred_element_type=jnp.float32)                 # (L, E2)  varies with j
    bi = jnp.dot(xrs_ref[0].astype(jnp.bfloat16), wr_ref[...].astype(jnp.bfloat16),
                 preferred_element_type=jnp.float32)                 # (TL, E2) varies with i

    y = (jnp.dot(cov, wc_ref[...].astype(jnp.bfloat16), preferred_element_type=jnp.float32)
         + jnp.dot(prev_n.astype(jnp.bfloat16), wp_ref[...].astype(jnp.bfloat16),
                   preferred_element_type=jnp.float32)
         + cb_ref[...])
    y3 = y.reshape(TL, L, E2) + aj[None, :, :] + bi[:, None, :]
    y_ref[0] = y3.astype(y_ref.dtype)

    # accumulate per-channel statistics for the (deferred) InstanceNorm2d
    yf = y3.reshape(TL * L, E2)
    part = jnp.concatenate(
        [jnp.sum(yf, axis=0, keepdims=True),
         jnp.sum(yf * yf, axis=0, keepdims=True)], axis=0)           # (2, E2)

    @pl.when(i == 0)
    def _():
        stats_ref[0] = part

    @pl.when(i > 0)
    def _():
        stats_ref[0] = stats_ref[0] + part


def proj2d(cov_norm, prev, xl_sum, xr_sum, wl, wr, wc, wp, cb, g2, b2, row_tile=128):
    B, L, _, E2 = cov_norm.shape
    E1 = xl_sum.shape[-1]
    TL = _pick_row_tile(L, row_tile)
    n_i = L // TL
    y, stats = pl.pallas_call(
        proj2d_kernel,
        out_shape=(jax.ShapeDtypeStruct((B, L, L, E2), cov_norm.dtype),
                   jax.ShapeDtypeStruct((B, 2, E2), jnp.float32)),
        grid=(B, n_i),
        in_specs=[
            pl.BlockSpec((1, TL, L, E2), lambda b, i: (b, i, 0, 0)),
            pl.BlockSpec((1, TL, L, E2), lambda b, i: (b, i, 0, 0)),
            pl.BlockSpec((1, L, E1), lambda b, i: (b, 0, 0)),
            pl.BlockSpec((1, TL, E1), lambda b, i: (b, i, 0)),
            pl.BlockSpec((E1, E2), lambda b, i: (0, 0)),
            pl.BlockSpec((E1, E2), lambda b, i: (0, 0)),
            pl.BlockSpec((E2, E2), lambda b, i: (0, 0)),
            pl.BlockSpec((E2, E2), lambda b, i: (0, 0)),
            pl.BlockSpec((1, E2), lambda b, i: (0, 0)),
            pl.BlockSpec((1, E2), lambda b, i: (0, 0)),
            pl.BlockSpec((1, E2), lambda b, i: (0, 0)),
        ],
        out_specs=(pl.BlockSpec((1, TL, L, E2), lambda b, i: (b, i, 0, 0)),
                   pl.BlockSpec((1, 2, E2), lambda b, i: (b, 0, 0))),
        compiler_params=_cparams(("parallel", "arbitrary")),
    )(cov_norm, prev, xl_sum, xr_sum, wl, wr, wc, wp, cb, g2, b2)
    n = float(L * L)
    mean = stats[:, 0, :] / n
    var = jnp.maximum(stats[:, 1, :] / n - mean * mean, 0.0)
    invstd = lax.rsqrt(var + EPS)
    return y, jnp.stack([mean, invstd], axis=1)                      # (B,L,L,E2), (B,2,E2)


# ----------------------------------------------------------------------------
# Kernel 4: fully fused ResNet2D block.
#   x_norm = (x - mean) * invstd      (deferred InstanceNorm of proj_2D, identity later)
#   y1     = ELU(IN(conv3x3(x_norm)))
#   out    = ELU(IN(conv3x3(y1)) + x_norm)
# The intermediate never leaves VMEM.  3x3 conv = 9 bf16 matmuls; the dy (row) shift
# is handled by a row-padded VMEM accumulator, the dx (col) shift by a col-padded
# VMEM source (3 shifted window loads per conv).
# ----------------------------------------------------------------------------
def resnet_block_kernel(x_ref, stats_ref, w1_ref, w2_ref, o_ref, src_ref, acc_ref):
    # x_ref: (1, L, L, C); stats_ref: (1, 2, C) [mean; inv_std]; w*: (9, C, C) tap=dy*3+dx
    # src_ref: (L, L+2, C) f32 scratch (j-padded conv source)
    # acc_ref: (L+2, L, C) f32 scratch (i-padded conv accumulator)
    L = x_ref.shape[1]
    C = x_ref.shape[3]

    mean = stats_ref[0, 0:1, :]
    invstd = stats_ref[0, 1:2, :]
    xn = (x_ref[0].astype(jnp.float32) - mean[None]) * invstd[None]  # (L, L, C)

    o_ref[0] = xn.astype(o_ref.dtype)            # stash residual in the output block
    src_ref[...] = jnp.zeros_like(src_ref)
    src_ref[:, 1:L + 1, :] = xn

    def conv3x3_in(w_ref):
        acc_ref[...] = jnp.zeros_like(acc_ref)
        for dx in range(3):
            xs = src_ref[:, dx:dx + L, :].astype(jnp.bfloat16).reshape(L * L, C)
            for dy in range(3):
                w = w_ref[dy * 3 + dx].astype(jnp.bfloat16)
                contrib = jnp.dot(xs, w, preferred_element_type=jnp.float32)
                acc_ref[pl.ds(2 - dy, L)] += contrib.reshape(L, L, C)
        conv = acc_ref[pl.ds(1, L)].reshape(L * L, C)
        mu = jnp.mean(conv, axis=0, keepdims=True)                   # InstanceNorm2d (affine=False)
        var = jnp.mean((conv - mu) ** 2, axis=0, keepdims=True)
        return ((conv - mu) * lax.rsqrt(var + EPS)).reshape(L, L, C)

    y1 = conv3x3_in(w1_ref)
    y1 = jnp.where(y1 > 0, y1, jnp.exp(jnp.minimum(y1, 0.0)) - 1.0)  # ELU
    src_ref[:, 1:L + 1, :] = y1                                      # reuse padded source

    y2 = conv3x3_in(w2_ref)
    y2 = y2 + o_ref[0].astype(jnp.float32)                           # residual
    y2 = jnp.where(y2 > 0, y2, jnp.exp(jnp.minimum(y2, 0.0)) - 1.0)  # ELU
    o_ref[0] = y2.astype(o_ref.dtype)


def resnet2d_block(x, stats, w1, w2):
    # TODO(synk): ResNet2DBlock source was not provided; assuming the standard basic
    # residual block out = ELU(IN(conv3x3(ELU(IN(conv3x3(x))))) + x) with bias=False,
    # dilation=1, dropout=0 (identity), InstanceNorm2d, ELU.
    # TODO(synk): per-batch full-L blocks; very large L on v7x would need L_i row tiling
    # with halo exchange + two-pass InstanceNorm.
    B, L, _, C = x.shape
    return pl.pallas_call(
        resnet_block_kernel,
        out_shape=jax.ShapeDtypeStruct((B, L, L, C), x.dtype),
        grid=(B,),
        in_specs=[
            pl.BlockSpec((1, L, L, C), lambda b: (b, 0, 0, 0)),
            pl.BlockSpec((1, 2, C), lambda b: (b, 0, 0)),
            pl.BlockSpec((9, C, C), lambda b: (0, 0, 0)),
            pl.BlockSpec((9, C, C), lambda b: (0, 0, 0)),
        ],
        out_specs=pl.BlockSpec((1, L, L, C), lambda b: (b, 0, 0, 0)),
        scratch_shapes=[pltpu.VMEM((L, L + 2, C), jnp.float32),
                        pltpu.VMEM((L + 2, L, C), jnp.float32)],
        compiler_params=_cparams(("parallel",)),
    )(x, stats, w1, w2)


# ----------------------------------------------------------------------------
# SeqWeightAttention (glue JAX; tiny compute).
# ----------------------------------------------------------------------------
def seq_weight_attention(feat, seq_mask, w1, b1, w2, b2):
    # TODO(synk): SeqWeightAttention source was not provided; implementing a mask-aware
    # additive-attention scorer with softmax over the MSA sequence axis, returning
    # weights of shape (B, N, L, 1) as consumed downstream.
    h = jnp.tanh(feat @ w1 + b1)                  # (B, N, L, E1)
    logits = h @ w2 + b2                          # (B, N, L, 1)
    mask = seq_mask[:, :, None, None]
    logits = jnp.where(mask > 0, logits, -1e9)
    return jax.nn.softmax(logits, axis=1)


# ----------------------------------------------------------------------------
# Full forward pass.
# ----------------------------------------------------------------------------
def msa_to_pair_forward(params, x, pair_feat_prev, seq_mask):
    B, N, L, D = x.shape
    E1 = params["w_proj1d"].shape[1]
    E2 = params["w_cov3"].shape[-1]

    # Stage 1: layer_norm_MSA + proj_1D_left (Linear + LayerNorm) — fused Pallas kernel
    feat_flat = ln_linear_ln(x.reshape(B * N * L, D),
                             params["ln_msa_g"], params["ln_msa_b"],
                             params["w_proj1d"], params["b_proj1d"],
                             params["ln_1d_g"], params["ln_1d_b"])
    feat_left = feat_flat.reshape(B, N, L, E1)
    feat_right = feat_left

    # Stage 2: sequence weights (glue)
    w = seq_weight_attention(feat_left, seq_mask,
                             params["attn_w1"], params["attn_b1"],
                             params["attn_w2"], params["attn_b2"])    # (B, N, L, 1)
    xlw = feat_left * w
    xl_sum = jnp.sum(xlw, axis=1)                                     # (B, L, E1)
    xr_sum = jnp.sum(feat_right * w, axis=1)                          # (B, L, E1)
    # TODO(synk): small wrapper transpose keeps per-channel slices of the weighted left
    # features lane-major inside cov_proj; fusing it would need an equivalent in-kernel
    # relayout of the same (small) tensor.
    xlw_t = jnp.transpose(xlw, (0, 3, 1, 2))                          # (B, E1, N, L)
    xr_flat = feat_right.reshape(B, N * L, E1)                        # rows ordered (n, j)

    # Stage 3: CovLayer outer product + projection + norm_pair1 — Pallas kernel
    cov_norm = cov_proj(xlw_t, xr_flat, params["w_cov3"], params["b_cov"],
                        params["np1_g"], params["np1_b"])             # (B, L, L, E2)

    # Stage 4: norm_pair2 + concat + 1x1 conv; InstanceNorm stats accumulated two-pass
    pair, in_stats = proj2d(cov_norm, pair_feat_prev, xl_sum, xr_sum,
                            params["w2d_left"], params["w2d_right"],
                            params["w2d_cov"], params["w2d_prev"], params["b2d"],
                            params["np2_g"], params["np2_b"])         # (B, L, L, E2)

    # Stage 5: ResNet2D blocks — fused Pallas kernels; proj_2D InstanceNorm folded into
    # the first block's load (identity stats afterwards).
    blocks = params["res_blocks"]
    if not blocks:
        # TODO(synk): no ResNet blocks configured -> apply the deferred InstanceNorm here.
        mean = in_stats[:, 0][:, None, None, :]
        invstd = in_stats[:, 1][:, None, None, :]
        return (pair - mean) * invstd

    ident = jnp.concatenate([jnp.zeros((B, 1, E2), jnp.float32),
                             jnp.ones((B, 1, E2), jnp.float32)], axis=1)
    for k, (w1, w2) in enumerate(blocks):
        stats = in_stats if k == 0 else ident
        pair = resnet2d_block(pair, stats, w1, w2)
    return pair  # (B, L, L, E2) — matches PyTorch output after its final permute


# ----------------------------------------------------------------------------
# Deterministic parameter initialization (shapes follow the module __init__).
# ----------------------------------------------------------------------------
def init_params(key, D, E1, E2, n_blocks):
    ks = jax.random.split(key, 16)

    def rnd(k, shape, scale):
        return (scale * jax.random.normal(k, shape)).astype(jnp.float32)

    p = dict(
        ln_msa_g=jnp.ones((1, D), jnp.float32), ln_msa_b=jnp.zeros((1, D), jnp.float32),
        w_proj1d=rnd(ks[0], (D, E1), 1.0 / float(D) ** 0.5),
        b_proj1d=jnp.zeros((1, E1), jnp.float32),
        ln_1d_g=jnp.ones((1, E1), jnp.float32), ln_1d_b=jnp.zeros((1, E1), jnp.float32),
        attn_w1=rnd(ks[1], (E1, E1), 1.0 / float(E1) ** 0.5),
        attn_b1=jnp.zeros((E1,), jnp.float32),
        attn_w2=rnd(ks[2], (E1, 1), 1.0 / float(E1) ** 0.5),
        attn_b2=jnp.zeros((1,), jnp.float32),
        w_cov3=rnd(ks[3], (E1, E1, E2), 1.0 / float(E1)),             # W3[l, r, e]
        b_cov=jnp.zeros((1, E2), jnp.float32),
        np1_g=jnp.ones((1, E2), jnp.float32), np1_b=jnp.zeros((1, E2), jnp.float32),
        np2_g=jnp.ones((1, E2), jnp.float32), np2_b=jnp.zeros((1, E2), jnp.float32),
    )
    c_in = 2 * E1 + 2 * E2
    w2d = rnd(ks[4], (c_in, E2), 1.0 / float(c_in) ** 0.5)            # 1x1 conv weight, split
    p["w2d_left"] = w2d[:E1]
    p["w2d_right"] = w2d[E1:2 * E1]
    p["w2d_cov"] = w2d[2 * E1:2 * E1 + E2]
    p["w2d_prev"] = w2d[2 * E1 + E2:]
    p["b2d"] = jnp.zeros((1, E2), jnp.float32)

    blocks = []
    for i in range(n_blocks):
        k1, k2 = jax.random.split(ks[5 + i], 2)
        blocks.append((rnd(k1, (9, E2, E2), 1.0 / float(9 * E2) ** 0.5),
                       rnd(k2, (9, E2, E2), 1.0 / float(9 * E2) ** 0.5)))
    p["res_blocks"] = blocks
    return p


if __name__ == "__main__":
    B, N, L, D = 2, 4, 8, 32      # batch, MSA depth, residues, emb_dim
    E1, E2 = 8, 16                # n_emb_1D, n_emb_2D

    key = jax.random.PRNGKey(0)
    kx, kp = jax.random.split(key, 2)
    x = jax.random.normal(kx, (B, N, L, D), jnp.float32)
    pair_feat_prev = jax.random.normal(kp, (B, L, L, E2), jnp.float32)
    seq_mask = jnp.ones((B, N), jnp.float32)

    params = init_params(jax.random.PRNGKey(42), D, E1, E2, n_blocks=1)

    out = msa_to_pair_forward(params, x, pair_feat_prev, seq_mask)
    out = jax.block_until_ready(out)
    assert out.shape == (B, L, L, E2), out.shape
    assert bool(jnp.all(jnp.isfinite(out)))
    print("KERNEL_OK")
</pallas_src>

<mosaic_0001>
module attributes {stable_mosaic.version = 11 : i64} {
  func.func @ln_linear_ln_kernel(%arg0: i32, %arg1: memref<64x32xf32, #tpu.memory_space<vmem>>, %arg2: memref<1x32xf32, #tpu.memory_space<vmem>>, %arg3: memref<1x32xf32, #tpu.memory_space<vmem>>, %arg4: memref<32x8xf32, #tpu.memory_space<vmem>>, %arg5: memref<1x8xf32, #tpu.memory_space<vmem>>, %arg6: memref<1x8xf32, #tpu.memory_space<vmem>>, %arg7: memref<1x8xf32, #tpu.memory_space<vmem>>, %arg8: memref<64x8xf32, #tpu.memory_space<vmem>>) attributes {dimension_semantics = [#tpu.dimension_semantics<parallel>], iteration_bounds = array<i64: 1>, scalar_prefetch = 0 : i64, scratch_operands = 0 : i64, tpu.core_type = #tpu.core_type<tc>, window_params = [{transform_indices = @transform_0, window_bounds = array<i64: 64, 32>}, {pipeline_mode = #tpu.pipeline_mode<synchronous>, transform_indices = @transform_1, window_bounds = array<i64: 1, 32>}, {pipeline_mode = #tpu.pipeline_mode<synchronous>, transform_indices = @transform_2, window_bounds = array<i64: 1, 32>}, {pipeline_mode = #tpu.pipeline_mode<synchronous>, transform_indices = @transform_3, window_bounds = array<i64: 32, 8>}, {pipeline_mode = #tpu.pipeline_mode<synchronous>, transform_indices = @transform_4, window_bounds = array<i64: 1, 8>}, {pipeline_mode = #tpu.pipeline_mode<synchronous>, transform_indices = @transform_5, window_bounds = array<i64: 1, 8>}, {pipeline_mode = #tpu.pipeline_mode<synchronous>, transform_indices = @transform_6, window_bounds = array<i64: 1, 8>}, {transform_indices = @transform_7, window_bounds = array<i64: 64, 8>}]} {
    %c0 = arith.constant 0 : index
    %c0_0 = arith.constant 0 : index
    %0 = vector.load %arg1[%c0, %c0_0] : memref<64x32xf32, #tpu.memory_space<vmem>>, vector<64x32xf32>
    %cst = arith.constant dense<0.000000e+00> : vector<64xf32>
    %1 = vector.multi_reduction <add>, %0, %cst [1] : vector<64x32xf32> to vector<64xf32>
    %2 = vector.shape_cast %1 : vector<64xf32> to vector<64x1xf32>
    %cst_1 = arith.constant 3.200000e+01 : f32
    %3 = vector.broadcast %cst_1 : f32 to vector<64x1xf32>
    %4 = arith.divf %2, %3 : vector<64x1xf32>
    %5 = vector.broadcast %4 : vector<64x1xf32> to vector<64x32xf32>
    %6 = arith.subf %0, %5 : vector<64x32xf32>
    %7 = arith.mulf %6, %6 : vector<64x32xf32>
    %cst_2 = arith.constant dense<0.000000e+00> : vector<64xf32>
    %8 = vector.multi_reduction <add>, %7, %cst_2 [1] : vector<64x32xf32> to vector<64xf32>
    %9 = vector.shape_cast %8 : vector<64xf32> to vector<64x1xf32>
    %cst_3 = arith.constant 3.200000e+01 : f32
    %10 = vector.broadcast %cst_3 : f32 to vector<64x1xf32>
    %11 = arith.divf %9, %10 : vector<64x1xf32>
    %12 = vector.broadcast %4 : vector<64x1xf32> to vector<64x32xf32>
    %13 = arith.subf %0, %12 : vector<64x32xf32>
    %cst_4 = arith.constant 9.99999974E-6 : f32
    %14 = vector.broadcast %cst_4 : f32 to vector<64x1xf32>
    %15 = arith.addf %11, %14 : vector<64x1xf32>
    %16 = math.rsqrt %15 : vector<64x1xf32>
    %17 = vector.broadcast %16 : vector<64x1xf32> to vector<64x32xf32>
    %18 = arith.mulf %13, %17 : vector<64x32xf32>
    %c0_5 = arith.constant 0 : index
    %c0_6 = arith.constant 0 : index
    %19 = vector.load %arg2[%c0_5, %c0_6] : memref<1x32xf32, #tpu.memory_space<vmem>>, vector<1x32xf32>
    %20 = vector.broadcast %19 : vector<1x32xf32> to vector<64x32xf32>
    %21 = arith.mulf %18, %20 : vector<64x32xf32>
    %c0_7 = arith.constant 0 : index
    %c0_8 = arith.constant 0 : index
    %22 = vector.load %arg3[%c0_7, %c0_8] : memref<1x32xf32, #tpu.memory_space<vmem>>, vector<1x32xf32>
    %23 = vector.broadcast %22 : vector<1x32xf32> to vector<64x32xf32>
    %24 = arith.addf %21, %23 : vector<64x32xf32>
    %25 = arith.truncf %24 : vector<64x32xf32> to vector<64x32xbf16>
    %c0_9 = arith.constant 0 : index
    %c0_10 = arith.constant 0 : index
    %26 = vector.load %arg4[%c0_9, %c0_10] : memref<32x8xf32, #tpu.memory_space<vmem>>, vector<32x8xf32>
    %27 = arith.truncf %26 : vector<32x8xf32> to vector<32x8xbf16>
    %cst_11 = arith.constant dense<0.000000e+00> : vector<64x8xf32>
    %28 = tpu.matmul %25, %27, %cst_11 {dimension_numbers = #tpu.dot_dimension_numbers<[1], [0], [0], [1], [0, 0, 1, 1], [], []>} : vector<64x32xbf16>, vector<32x8xbf16>, vector<64x8xf32> -> vector<64x8xf32>
    %c0_12 = arith.constant 0 : index
    %c0_13 = arith.constant 0 : index
    %29 = vector.load %arg5[%c0_12, %c0_13] : memref<1x8xf32, #tpu.memory_space<vmem>>, vector<1x8xf32>
    %30 = vector.broadcast %29 : vector<1x8xf32> to vector<64x8xf32>
    %31 = arith.addf %28, %30 : vector<64x8xf32>
    %cst_14 = arith.constant dense<0.000000e+00> : vector<64xf32>
    %32 = vector.multi_reduction <add>, %31, %cst_14 [1] : vector<64x8xf32> to vector<64xf32>
    %33 = vector.shape_cast %32 : vector<64xf32> to vector<64x1xf32>
    %cst_15 = arith.constant 8.000000e+00 : f32
    %34 = vector.broadcast %cst_15 : f32 to vector<64x1xf32>
    %35 = arith.divf %33, %34 : vector<64x1xf32>
    %36 = vector.broadcast %35 : vector<64x1xf32> to vector<64x8xf32>
    %37 = arith.subf %31, %36 : vector<64x8xf32>
    %38 = arith.mulf %37, %37 : vector<64x8xf32>
    %cst_16 = arith.constant dense<0.000000e+00> : vector<64xf32>
    %39 = vector.multi_reduction <add>, %38, %cst_16 [1] : vector<64x8xf32> to vector<64xf32>
    %40 = vector.shape_cast %39 : vector<64xf32> to vector<64x1xf32>
    %cst_17 = arith.constant 8.000000e+00 : f32
    %41 = vector.broadcast %cst_17 : f32 to vector<64x1xf32>
    %42 = arith.divf %40, %41 : vector<64x1xf32>
    %43 = vector.broadcast %35 : vector<64x1xf32> to vector<64x8xf32>
    %44 = arith.subf %31, %43 : vector<64x8xf32>
    %cst_18 = arith.constant 9.99999974E-6 : f32
    %45 = vector.broadcast %cst_18 : f32 to vector<64x1xf32>
    %46 = arith.addf %42, %45 : vector<64x1xf32>
    %47 = math.rsqrt %46 : vector<64x1xf32>
    %48 = vector.broadcast %47 : vector<64x1xf32> to vector<64x8xf32>
    %49 = arith.mulf %44, %48 : vector<64x8xf32>
    %c0_19 = arith.constant 0 : index
    %c0_20 = arith.constant 0 : index
    %50 = vector.load %arg6[%c0_19, %c0_20] : memref<1x8xf32, #tpu.memory_space<vmem>>, vector<1x8xf32>
    %51 = vector.broadcast %50 : vector<1x8xf32> to vector<64x8xf32>
    %52 = arith.mulf %49, %51 : vector<64x8xf32>
    %c0_21 = arith.constant 0 : index
    %c0_22 = arith.constant 0 : index
    %53 = vector.load %arg7[%c0_21, %c0_22] : memref<1x8xf32, #tpu.memory_space<vmem>>, vector<1x8xf32>
    %54 = vector.broadcast %53 : vector<1x8xf32> to vector<64x8xf32>
    %55 = arith.addf %52, %54 : vector<64x8xf32>
    %c0_23 = arith.constant 0 : index
    %c0_24 = arith.constant 0 : index
    %56 = vector.load %arg8[%c0_23, %c0_24] : memref<64x8xf32, #tpu.memory_space<vmem>>, vector<64x8xf32>
    tpu.vector_store %arg8[%c0_23, %c0_24], %55 {strides = array<i32>} : memref<64x8xf32, #tpu.memory_space<vmem>>, vector<64x8xf32>,
    return
  }
  func.func @transform_0(%arg0: i32) -> (i32, i32) {
    %c0_i32 = arith.constant 0 : i32
    %c0_i32_0 = arith.constant 0 : i32
    return %arg0, %c0_i32 : i32, i32
  }
  func.func @transform_1(%arg0: i32) -> (i32, i32) {
    %c0_i32 = arith.constant 0 : i32
    %c0_i32_0 = arith.constant 0 : i32
    %c0_i32_1 = arith.constant 0 : i32
    return %c0_i32, %c0_i32_0 : i32, i32
  }
  func.func @transform_2(%arg0: i32) -> (i32, i32) {
    %c0_i32 = arith.constant 0 : i32
    %c0_i32_0 = arith.constant 0 : i32
    %c0_i32_1 = arith.constant 0 : i32
    return %c0_i32, %c0_i32_0 : i32, i32
  }
  func.func @transform_3(%arg0: i32) -> (i32, i32) {
    %c0_i32 = arith.constant 0 : i32
    %c0_i32_0 = arith.constant 0 : i32
    %c0_i32_1 = arith.constant 0 : i32
    return %c0_i32, %c0_i32_0 : i32, i32
  }
  func.func @transform_4(%arg0: i32) -> (i32, i32) {
    %c0_i32 = arith.constant 0 : i32
    %c0_i32_0 = arith.constant 0 : i32
    %c0_i32_1 = arith.constant 0 : i32
    return %c0_i32, %c0_i32_0 : i32, i32
  }
  func.func @transform_5(%arg0: i32) -> (i32, i32) {
    %c0_i32 = arith.constant 0 : i32
    %c0_i32_0 = arith.constant 0 : i32
    %c0_i32_1 = arith.constant 0 : i32
    return %c0_i32, %c0_i32_0 : i32, i32
  }
  func.func @transform_6(%arg0: i32) -> (i32, i32) {
    %c0_i32 = arith.constant 0 : i32
    %c0_i32_0 = arith.constant 0 : i32
    %c0_i32_1 = arith.constant 0 : i32
    return %c0_i32, %c0_i32_0 : i32, i32
  }
  func.func @transform_7(%arg0: i32) -> (i32, i32) {
    %c0_i32 = arith.constant 0 : i32
    %c0_i32_0 = arith.constant 0 : i32
    return %arg0, %c0_i32 : i32, i32
  }
}

</mosaic_0001>

<bundles_post_ra>
// kernel: tpu_custom_call.1
= control target key start
LH: loop header
LB: loop body
LE: loop exit
PB: predicated region body
PF: predicated region fallthrough
CT: control target
= control target key end

     0   :  { %12 = vsyncpa [#allocation3], 0  ;;  %s1053_s0 = inlined_call_operand.hbm [shape: f32[64,32], index: 0, kind: input, shape index: {}]   ;;  %s1054_s1 = inlined_call_operand.hbm [shape: f32[1,32], index: 1, kind: input, shape index: {}]   ;;  %s1055_s2 = inlined_call_operand.hbm [shape: f32[1,32], index: 2, kind: input, shape index: {}]   ;;  %s1056_s3 = inlined_call_operand.hbm [shape: f32[32,8], index: 3, kind: input, shape index: {}]   ;;  %s1057_s4 = inlined_call_operand.hbm [shape: f32[1,8], index: 4, kind: input, shape index: {}]   ;;  %s1058_s5 = inlined_call_operand.hbm [shape: f32[1,8], index: 5, kind: input, shape index: {}]   ;;  %s1059_s6 = inlined_call_operand.hbm [shape: f32[1,8], index: 6, kind: input, shape index: {}]   ;;  %s1060_s7 = inlined_call_operand.hbm [shape: f32[64,8], index: 7, kind: output, shape index: {}]  }
   0x1   :  { %13 = vsyncpa [#allocation6], 0 }
   0x2   :  { %14 = vsyncpa [#allocation9], 0 }
   0x3   :  { %15 = vsyncpa [#allocation12], 0 }
   0x4   :  { %16 = vsyncpa [#allocation4], 0  ;;  %s774_s24 = smov [#allocation5]   ;;  %s588_s28 = scalar_lea.hbm %s1054_s1, 16 }
   0x5   :  { %s35_s25 = sshll.u32 %s774_s24, 4  ;;  %p589_p0 = scmp.ne.s32.totalorder %s1054_s1, %s588_s28  ;;  %s36_s25 = int_to_ptr.vmem [resolvable:$true] %s35_s25 }
   0x6   :  { %p592_p1 = scmp.lt.u32.totalorder %s588_s28, %s1054_s1 }
   0x8   :  { %p594_p2 = pnand %p592_p1, %p589_p0 }
   0xa   :  { %597 = shalt.err (!%p594_p2)
}
   0xb   :  { %s598_s10 = scalar_lea.vmem %s36_s25, 16  ;;  %s602_s11 = scalar_lea.vmem %s36_s25, 32 }
   0xc   :  { %p599_p3 = scmp.ne.s32.totalorder %s36_s25, %s598_s10  ;;  %p603_p4 = scmp.lt.s32.totalorder %s36_s25, %s36_s25 }
   0xd   :  { %p604_p5 = scmp.lt.s32.totalorder %s602_s11, %s598_s10 }
   0xf   :  { %p605_p6 = por %p604_p5, %p603_p4 }
  0x11   :  { %p606_p7 = pnand %p605_p6, %p599_p3 }
  0x13   :  { %609 = shalt.err (!%p606_p7)
}
  0x14   :  { %38 = dma.hbm_to_vmem [thread:$0]  %s1054_s1, 16, %s36_s25, [#allocation6]  }
  0x15   :  { %s775_s14 = smov [#allocation8]   ;;  %s776_s16 = smov [#allocation11]  }
  0x16   :  { %s54_s15 = sshll.u32 %s775_s14, 4  ;;  %s77_s17 = sshll.u32 %s776_s16, 4  ;;  %s55_s15 = int_to_ptr.vmem [resolvable:$true] %s54_s15  ;;  %s78_s17 = int_to_ptr.vmem [resolvable:$true] %s77_s17 }
  0x17   :  { %s610_s20 = scalar_lea.hbm %s1056_s3, 512 }
  0x18   :  { %p611_p8 = scmp.ne.s32.totalorder %s1056_s3, %s610_s20  ;;  %p614_p9 = scmp.lt.u32.totalorder %s610_s20, %s1056_s3 }
  0x1a   :  { %p616_p10 = pnand %p614_p9, %p611_p8 }
  0x1c   :  { %619 = shalt.err (!%p616_p10)
}
  0x1d   :  { %s620_s1 = scalar_lea.vmem %s55_s15, 512  ;;  %p625_p12 = scmp.lt.s32.totalorder %s55_s15, %s55_s15 }
  0x1e   :  { %p621_p11 = scmp.ne.s32.totalorder %s55_s15, %s620_s1  ;;  %p626_p13 = scmp.lt.s32.totalorder %s620_s1, %s620_s1 }
  0x20   :  { %p627_p0 = por %p626_p13, %p625_p12 }
  0x22   :  { %p628_p1 = pnand %p627_p0, %p621_p11 }
  0x24   :  { %631 = shalt.err (!%p628_p1)
}
  0x25   :  { %s777_s25 = smov 128   ;;  %s778_s26 = smov 8  }
  0x26   :  { %60 = dma.hbm_to_vmem [thread:$0]  %s1056_s3, 512, %s55_s15, [#allocation9], %s777_s25, %s777_s25, %s778_s26  }
  0x27   :  { %s632_s8 = scalar_lea.hbm %s1058_s5, 16 }
  0x28   :  { %p633_p2 = scmp.ne.s32.totalorder %s1058_s5, %s632_s8  ;;  %p636_p3 = scmp.lt.u32.totalorder %s632_s8, %s1058_s5 }
  0x2a   :  { %p638_p4 = pnand %p636_p3, %p633_p2 }
  0x2c   :  { %641 = shalt.err (!%p638_p4)
}
  0x2d   :  { %s642_s13 = scalar_lea.vmem %s78_s17, 16  ;;  %s646_s14 = scalar_lea.vmem %s78_s17, 32 }
  0x2e   :  { %p643_p5 = scmp.ne.s32.totalorder %s78_s17, %s642_s13  ;;  %p647_p6 = scmp.lt.s32.totalorder %s78_s17, %s78_s17 }
  0x2f   :  { %p648_p7 = scmp.lt.s32.totalorder %s646_s14, %s642_s13 }
  0x31   :  { %p649_p8 = por %p648_p7, %p647_p6 }
  0x33   :  { %p650_p9 = pnand %p649_p8, %p643_p5 }
  0x35   :  { %653 = shalt.err (!%p650_p9)
}
  0x36   :  { %80 = dma.hbm_to_vmem [thread:$0]  %s1058_s5, 16, %s78_s17, [#allocation12]  }
  0x37   :  { %s779_s16 = smov [#allocation2]   ;;  %s780_s19 = smov [#allocation7]  }
  0x38   :  { %s22_s18 = sshll.u32 %s779_s16, 4  ;;  %s45_s20 = sshll.u32 %s780_s19, 4  ;;  %s23_s18 = int_to_ptr.vmem [resolvable:$true] %s22_s18  ;;  %s46_s20 = int_to_ptr.vmem [resolvable:$true] %s45_s20 }
  0x39   :  { %s654_s23 = scalar_lea.hbm %s1053_s0, 1024 }
  0x3a   :  { %p655_p10 = scmp.ne.s32.totalorder %s1053_s0, %s654_s23  ;;  %p658_p11 = scmp.lt.u32.totalorder %s654_s23, %s1053_s0 }
  0x3c   :  { %p660_p12 = pnand %p658_p11, %p655_p10 }
  0x3e   :  { %663 = shalt.err (!%p660_p12)
}
  0x3f   :  { %s664_s5 = scalar_lea.vmem %s23_s18, 1024  ;;  %p669_p0 = scmp.lt.s32.totalorder %s23_s18, %s23_s18 }
  0x40   :  { %p665_p13 = scmp.ne.s32.totalorder %s23_s18, %s664_s5  ;;  %p670_p1 = scmp.lt.s32.totalorder %s664_s5, %s664_s5 }
  0x42   :  { %p671_p2 = por %p670_p1, %p669_p0 }
  0x44   :  { %p672_p3 = pnand %p671_p2, %p665_p13 }
  0x46   :  { %675 = shalt.err (!%p672_p3)
}
  0x47   :  { %28 = dma.hbm_to_vmem [thread:$0]  %s1053_s0, 1024, %s23_s18, [#allocation3], %s777_s25, %s777_s25, %s778_s26  }
  0x48   :  { %s676_s9 = scalar_lea.hbm %s1055_s2, 16 }
  0x49   :  { %p677_p4 = scmp.ne.s32.totalorder %s1055_s2, %s676_s9  ;;  %p680_p5 = scmp.lt.u32.totalorder %s676_s9, %s1055_s2 }
  0x4b   :  { %p682_p6 = pnand %p680_p5, %p677_p4 }
  0x4d   :  { %685 = shalt.err (!%p682_p6)
}
  0x4e   :  { %s686_s14 = scalar_lea.vmem %s46_s20, 16  ;;  %s690_s3 = scalar_lea.vmem %s46_s20, 32 }
  0x4f   :  { %p687_p7 = scmp.ne.s32.totalorder %s46_s20, %s686_s14  ;;  %p691_p8 = scmp.lt.s32.totalorder %s46_s20, %s46_s20 }
  0x50   :  { %p692_p9 = scmp.lt.s32.totalorder %s690_s3, %s686_s14 }
  0x52   :  { %p693_p10 = por %p692_p9, %p691_p8 }
  0x54   :  { %p694_p11 = pnand %p693_p10, %p687_p7 }
  0x56   :  { %697 = shalt.err (!%p694_p11)
}
  0x57   :  { %48 = dma.hbm_to_vmem [thread:$0]  %s1055_s2, 16, %s46_s20, [#allocation6]  }
  0x58   :  { %s781_s16 = smov [#allocation10]   ;;  %s782_s19 = smov [#allocation13]  }
  0x59   :  { %s67_s18 = sshll.u32 %s781_s16, 4  ;;  %s87_s21 = sshll.u32 %s782_s19, 4  ;;  %s68_s18 = int_to_ptr.vmem [resolvable:$true] %s67_s18  ;;  %s88_s21 = int_to_ptr.vmem [resolvable:$true] %s87_s21 }
  0x5a   :  { %s698_s24 = scalar_lea.hbm %s1057_s4, 16 }
  0x5b   :  { %p699_p12 = scmp.ne.s32.totalorder %s1057_s4, %s698_s24  ;;  %p702_p13 = scmp.lt.u32.totalorder %s698_s24, %s1057_s4 }
  0x5d   :  { %p704_p0 = pnand %p702_p13, %p699_p12 }
  0x5f   :  { %707 = shalt.err (!%p704_p0)
}
  0x60   :  { %s708_s2 = scalar_lea.vmem %s68_s18, 16  ;;  %s712_s20 = scalar_lea.vmem %s68_s18, 32 }
  0x61   :  { %p709_p1 = scmp.ne.s32.totalorder %s68_s18, %s708_s2  ;;  %p713_p2 = scmp.lt.s32.totalorder %s68_s18, %s68_s18 }
  0x62   :  { %p714_p3 = scmp.lt.s32.totalorder %s712_s20, %s708_s2 }
  0x64   :  { %p715_p4 = por %p714_p3, %p713_p2 }
  0x66   :  { %p716_p5 = pnand %p715_p4, %p709_p1 }
  0x68   :  { %719 = shalt.err (!%p716_p5)
}
  0x69   :  { %70 = dma.hbm_to_vmem [thread:$0]  %s1057_s4, 16, %s68_s18, [#allocation9]  }
  0x6a   :  { %s720_s9 = scalar_lea.hbm %s1059_s6, 16 }
  0x6b   :  { %p721_p6 = scmp.ne.s32.totalorder %s1059_s6, %s720_s9  ;;  %p724_p7 = scmp.lt.u32.totalorder %s720_s9, %s1059_s6 }
  0x6d   :  { %p726_p8 = pnand %p724_p7, %p721_p6 }
  0x6f   :  { %729 = shalt.err (!%p726_p8)
}
  0x70   :  { %s730_s14 = scalar_lea.vmem %s88_s21, 16  ;;  %s734_s3 = scalar_lea.vmem %s88_s21, 32 }
  0x71   :  { %p731_p9 = scmp.ne.s32.totalorder %s88_s21, %s730_s14  ;;  %p735_p10 = scmp.lt.s32.totalorder %s88_s21, %s88_s21 }
  0x72   :  { %p736_p11 = scmp.lt.s32.totalorder %s734_s3, %s730_s14 }
  0x74   :  { %p737_p12 = por %p736_p11, %p735_p10 }
  0x76   :  { %p738_p13 = pnand %p737_p12, %p731_p9 }
  0x78   :  { %741 = shalt.err (!%p738_p13)
}
  0x79   :  { %90 = dma.hbm_to_vmem [thread:$0]  %s1059_s6, 16, %s88_s21, [#allocation12]  }
  0x7a   :  { %764 = dma.done.wait [#allocation3], 1024  }
  0x7b   :  { %765 = vsyncadd [#allocation3], 4294966272 }
  0x7c   :  { %766 = dma.done.wait [#allocation6], 32  }
  0x7d   :  { %767 = vsyncadd [#allocation6], 4294967264 }
  0x7e   :  { %768 = dma.done.wait [#allocation9], 528  }
  0x7f   :  { %769 = vsyncadd [#allocation9], 4294966768 }
  0x80   :  { %770 = dma.done.wait [#allocation12], 32  }
  0x81   :  { %771 = vsyncadd [#allocation12], 4294967264  ;;  %vm121_vm0 = vcmask 261120   ;;  %v113_v0 = vld [vmem:[#allocation2] sm:$0xff]  ;;  %v114_v2 = vld [vmem:[#allocation2 + $0x8] sm:$0xff]  ;;  %vm351_vm1 = vcmask 64512  }
  0x82   :  { %v117_v1 = vld [vmem:[#allocation2 + $0x20] sm:$0xff]  ;;  %v122_v3 = vsel %vm121_vm0, %v113_v0, 0.0  ;;  %v118_v5 = vld [vmem:[#allocation2 + $0x28] sm:$0xff]  ;;  %v125_v6 = vsel %vm121_vm0, %v114_v2, 0.0  ;;  %v115_v8 = vld [vmem:[#allocation2 + $0x10] sm:$0xff]  ;;  %s783_s6 = smov [#allocation14]  }
  0x83   :  { %v134_v4 = vsel %vm121_vm0, %v117_v1, 0.0  ;;  %123 = vadd.xlane.f32.xlu0 %v122_v3  ;;  %v137_v7 = vsel %vm121_vm0, %v118_v5, 0.0  ;;  %v116_v9 = vld [vmem:[#allocation2 + $0x18] sm:$0xff]  ;;  %v128_v10 = vsel %vm121_vm0, %v115_v8, 0.0  ;;  %v119_v12 = vld [vmem:[#allocation2 + $0x30] sm:$0xff]  ;;  %v261_v56 = vld [vmem:[#allocation8] sm:$0xff] }
  0x84   :  { %135 = vadd.xlane.f32.xlu1 %v134_v4  ;;  %v131_v11 = vsel %vm121_vm0, %v116_v9, 0.0  ;;  %v120_v13 = vld [vmem:[#allocation2 + $0x38] sm:$0xff]  ;;  %v140_v14 = vsel %vm121_vm0, %v119_v12, 0.0  ;;  %v262_v57 = vld [vmem:[#allocation8 + $0x8] sm:$0xff]  ;;  %s500_s15 = sshll.u32 %s783_s6, 4  ;;  %s501_s15 = int_to_ptr.vmem [resolvable:$true] %s500_s15 }
  0x85   :  { %v143_v15 = vsel %vm121_vm0, %v120_v13, 0.0  ;;  %v265_v58 = vpack.c.bf16 %v262_v57, %v261_v56  ;;  %v263_v59 = vld [vmem:[#allocation8 + $0x10] sm:$0xff]  ;;  %v264_v60 = vld [vmem:[#allocation8 + $0x18] sm:$0xff]  ;;  %s742_s16 = scalar_lea.vmem %s501_s15, 1024  ;;  %p747_p1 = scmp.lt.s32.totalorder %s501_s15, %s501_s15 }
  0x86   :  { %v266_v61 = vpack.c.bf16 %v264_v60, %v263_v59  ;;  %p743_p0 = scmp.ne.s32.totalorder %s501_s15, %s742_s16  ;;  %p748_p2 = scmp.lt.s32.totalorder %s742_s16, %s742_s16 }
  0x87   :  { %126 = vadd.xlane.f32.xlu0 %v125_v6  ;;  %530 = vmatprep.subr.bf16.mxu0 %v265_v58 }
  0x88   :  { %138 = vadd.xlane.f32.xlu1 %v137_v7  ;;  %542 = vmatprep.subr.bf16.mxu1 %v265_v58  ;;  %p749_p3 = por %p748_p2, %p747_p1 }
  0x89   :  { %531 = vmatpush3.bf16.msra.mxu0 %v265_v58  ;;  %544 = vmatpush3.bf16.msra.mxu1 %v265_v58 }
  0x8a   :  { %532 = vmatprep.subr.bf16.mxu0 %v266_v61  ;;  %543 = vmatprep.subr.bf16.mxu1 %v266_v61  ;;  %p750_p4 = pnand %p749_p3, %p743_p0 }
  0x8b   :  { %129 = vadd.xlane.f32.xlu0 %v128_v10 }
  0x8c   :  { %132 = vadd.xlane.f32.xlu1 %v131_v11 }
  0x8d   :  { %533 = vmatpush3.bf16.msra.mxu0 %v266_v61  ;;  %545 = vmatpush3.bf16.msra.mxu1 %v266_v61 }
  0x8f   :  { %141 = vadd.xlane.f32.xlu0 %v140_v14 }
  0x90   :  { %144 = vadd.xlane.f32.xlu1 %v143_v15 }
 0x110   :  { %v124_v16 = vpop.xlane.xlu0 %123 }
 0x111   :  { %v136_v17 = vpop.xlane.xlu1 %135  ;;  %v147_v18 = vmul.f32 0.03125, %v124_v16 }
 0x112   :  { %v151_v19 = vmul.f32 0.03125, %v136_v17 }
 0x113   :  { %v922_v20 = vsub.f32 %v113_v0, %v147_v18 }
 0x114   :  { %v924_v21 = vsub.f32 %v117_v1, %v151_v19  ;;  %v127_v22 = vpop.xlane.xlu0 %126 }
 0x115   :  { %v139_v23 = vpop.xlane.xlu1 %138  ;;  %v148_v24 = vmul.f32 0.03125, %v127_v22  ;;  %v163_v26 = vmul.f32 %v922_v20, %v922_v20 }
 0x116   :  { %v152_v25 = vmul.f32 0.03125, %v139_v23  ;;  %v167_v27 = vmul.f32 %v924_v21, %v924_v21 }
 0x117   :  { %v930_v28 = vsub.f32 %v114_v2, %v148_v24  ;;  %v171_v30 = vsel %vm121_vm0, %v163_v26, 0.0 }
 0x118   :  { %v932_v29 = vsub.f32 %v118_v5, %v152_v25  ;;  %172 = vadd.xlane.f32.xlu0 %v171_v30  ;;  %v130_v31 = vpop.xlane.xlu0 %129  ;;  %v183_v33 = vsel %vm121_vm0, %v167_v27, 0.0  ;;  %v515_v25 = vld [vmem:[#allocation5] ss:$0 sm:$0xff] }
 0x119   :  { %v133_v32 = vpop.xlane.xlu1 %132  ;;  %v149_v34 = vmul.f32 0.03125, %v130_v31  ;;  %v164_v36 = vmul.f32 %v930_v28, %v930_v28 }
 0x11a   :  { %v150_v35 = vmul.f32 0.03125, %v133_v32  ;;  %v168_v37 = vmul.f32 %v932_v29, %v932_v29 }
 0x11b   :  { %v940_v38 = vsub.f32 %v115_v8, %v149_v34  ;;  %v174_v40 = vsel %vm121_vm0, %v164_v36, 0.0 }
 0x11c   :  { %v942_v39 = vsub.f32 %v116_v9, %v150_v35  ;;  %184 = vadd.xlane.f32.xlu0 %v183_v33  ;;  %175 = vadd.xlane.f32.xlu1 %v174_v40  ;;  %v142_v41 = vpop.xlane.xlu0 %141  ;;  %v186_v43 = vsel %vm121_vm0, %v168_v37, 0.0  ;;  %v516_v33 = vld [vmem:[#allocation7] ss:$0 sm:$0xff] }
 0x11d   :  { %v145_v42 = vpop.xlane.xlu1 %144  ;;  %v153_v44 = vmul.f32 0.03125, %v142_v41  ;;  %v165_v46 = vmul.f32 %v940_v38, %v940_v38 }
 0x11e   :  { %v154_v45 = vmul.f32 0.03125, %v145_v42  ;;  %v166_v47 = vmul.f32 %v942_v39, %v942_v39 }
 0x11f   :  { %v950_v48 = vsub.f32 %v119_v12, %v153_v44  ;;  %v177_v50 = vsel %vm121_vm0, %v165_v46, 0.0 }
 0x120   :  { %v952_v49 = vsub.f32 %v120_v13, %v154_v45  ;;  %187 = vadd.xlane.f32.xlu1 %v186_v43  ;;  %178 = vadd.xlane.f32.xlu0 %v177_v50  ;;  %v180_v51 = vsel %vm121_vm0, %v166_v47, 0.0 }
 0x121   :  { %v169_v52 = vmul.f32 %v950_v48, %v950_v48 }
 0x122   :  { %v170_v53 = vmul.f32 %v952_v49, %v952_v49 }
 0x123   :  { %v189_v54 = vsel %vm121_vm0, %v169_v52, 0.0 }
 0x124   :  { %181 = vadd.xlane.f32.xlu1 %v180_v51  ;;  %190 = vadd.xlane.f32.xlu0 %v189_v54  ;;  %v192_v55 = vsel %vm121_vm0, %v170_v53, 0.0 }
 0x128   :  { %193 = vadd.xlane.f32.xlu1 %v192_v55 }
 0x1a5   :  { %v173_v62 = vpop.xlane.xlu0 %172 }
 0x1a6   :  { %v195_v63 = vmul.f32 0.03125, %v173_v62 }
 0x1a8   :  { %v203_v0 = vadd.f32 1e-05, %v195_v63 }
 0x1a9   :  { %v176_v1 = vpop.xlane.xlu1 %175  ;;  %v185_v2 = vpop.xlane.xlu0 %184 }
 0x1aa   :  { %556 = vrsqrt.f32 %v203_v0  ;;  %v196_v3 = vmul.f32 0.03125, %v176_v1  ;;  %v199_v4 = vmul.f32 0.03125, %v185_v2 }
 0x1ac   :  { %v204_v5 = vadd.f32 1e-05, %v196_v3  ;;  %v207_v6 = vadd.f32 1e-05, %v199_v4 }
 0x1ad   :  { %v188_v7 = vpop.xlane.xlu1 %187  ;;  %v179_v8 = vpop.xlane.xlu0 %178 }
 0x1ae   :  { %558 = vrsqrt.f32 %v204_v5  ;;  %v200_v9 = vmul.f32 0.03125, %v188_v7  ;;  %v197_v10 = vmul.f32 0.03125, %v179_v8 }
 0x1af   :  { %560 = vrsqrt.f32 %v207_v6 }
 0x1b0   :  { %v208_v11 = vadd.f32 1e-05, %v200_v9  ;;  %v205_v12 = vadd.f32 1e-05, %v197_v10 }
 0x1b1   :  { %v182_v13 = vpop.xlane.xlu1 %181  ;;  %v191_v14 = vpop.xlane.xlu0 %190 }
 0x1b2   :  { %562 = vrsqrt.f32 %v208_v11  ;;  %v198_v15 = vmul.f32 0.03125, %v182_v13  ;;  %v201_v16 = vmul.f32 0.03125, %v191_v14 }
 0x1b3   :  { %564 = vrsqrt.f32 %v205_v12 }
 0x1b4   :  { %v557_v17 = vpop.eup %556  ;;  %v206_v18 = vadd.f32 1e-05, %v198_v15  ;;  %v209_v19 = vadd.f32 1e-05, %v201_v16 }
 0x1b5   :  { %v194_v22 = vpop.xlane.xlu1 %193  ;;  %v219_v23 = vmul.f32 %v557_v17, %v922_v20 }
 0x1b6   :  { %566 = vrsqrt.f32 %v206_v18  ;;  %v202_v24 = vmul.f32 0.03125, %v194_v22 }
 0x1b7   :  { %568 = vrsqrt.f32 %v209_v19  ;;  %v234_v32 = vmul.f32 %v515_v25, %v219_v23 }
 0x1b8   :  { %v559_v26 = vpop.eup %558  ;;  %v210_v27 = vadd.f32 1e-05, %v202_v24 }
 0x1b9   :  { %v561_v30 = vpop.eup %560  ;;  %v220_v31 = vmul.f32 %v559_v26, %v930_v28  ;;  %v249_v40 = vadd.f32 %v516_v33, %v234_v32 }
 0x1ba   :  { %570 = vrsqrt.f32 %v210_v27  ;;  %v223_v34 = vmul.f32 %v561_v30, %v924_v21 }
 0x1bb   :  { %v235_v35 = vmul.f32 %v515_v25, %v220_v31 }
 0x1bc   :  { %v563_v36 = vpop.eup %562  ;;  %v238_v42 = vmul.f32 %v515_v25, %v223_v34 }
 0x1bd   :  { %v565_v37 = vpop.eup %564  ;;  %v250_v41 = vadd.f32 %v516_v33, %v235_v35  ;;  %v224_v20 = vmul.f32 %v563_v36, %v932_v29 }
 0x1be   :  { %v221_v43 = vmul.f32 %v565_v37, %v940_v38  ;;  %v253_v50 = vadd.f32 %v516_v33, %v238_v42 }
 0x1bf   :  { %v257_v44 = vpack.c.bf16 %v250_v41, %v249_v40  ;;  %v239_v45 = vmul.f32 %v515_v25, %v224_v20 }
 0x1c0   :  { %v567_v46 = vpop.eup %566  ;;  %v236_v51 = vmul.f32 %v515_v25, %v221_v43 }
 0x1c1   :  { %v569_v47 = vpop.eup %568  ;;  %v222_v28 = vmul.f32 %v567_v46, %v942_v39  ;;  %534 = vmatprep.mubr.msk.bf16.mxu0 %vm121_vm0, %v257_v44  ;;  %v254_v21 = vadd.f32 %v516_v33, %v239_v45 }
 0x1c2   :  { %v225_v52 = vmul.f32 %v569_v47, %v950_v48  ;;  %v251_v38 = vadd.f32 %v516_v33, %v236_v51  ;;  %v517_v48 = vld [vmem:[#allocation10] ss:$0 sm:$0xff] }
 0x1c3   :  { %v259_v53 = vpack.c.bf16 %v254_v21, %v253_v50  ;;  %v237_v54 = vmul.f32 %v515_v25, %v222_v28 }
 0x1c4   :  { %v571_v55 = vpop.eup %570  ;;  %v240_v57 = vmul.f32 %v515_v25, %v225_v52 }
 0x1c5   :  { %v226_v29 = vmul.f32 %v571_v55, %v952_v49  ;;  %538 = vmatprep.mubr.msk.bf16.mxu1 %vm121_vm0, %v259_v53  ;;  %v252_v56 = vadd.f32 %v516_v33, %v237_v54 }
 0x1c6   :  { %v255_v39 = vadd.f32 %v516_v33, %v240_v57 }
 0x1c7   :  { %v258_v58 = vpack.c.bf16 %v252_v56, %v251_v38  ;;  %v241_v59 = vmul.f32 %v515_v25, %v226_v29 }
 0x1c9   :  { %535 = vmatmul.mubr.msk.bf16.vlgmr.msra.gmra.mrb[0].mxu0 %vm121_vm0, %v258_v58  ;;  %v256_v60 = vadd.f32 %v516_v33, %v241_v59 }
 0x1cb   :  { %v260_v61 = vpack.c.bf16 %v256_v60, %v255_v39 }
 0x1cd   :  { %539 = vmatmul.mubr.msk.bf16.vlgmr.msra.gmra.mrb[0].mxu1 %vm121_vm0, %v260_v61 }
 0x29c   :  { %v536_v62 = vpop.f32.mrb[0].mxu0 }
 0x29d   :  { %v329_v63 = vadd.f32 %v536_v62, %v517_v48  ;;  %v320_v0 = vpop.f32.mrb[1].mxu0 }
 0x29e   :  { %v537_v49 = vpop.f32.mrb[2].mxu0  ;;  %v321_v1 = vadd.f32 %v517_v48, %v320_v0 }
 0x29f   :  { %v332_v2 = vadd.f32 %v537_v49, %v517_v48  ;;  %v323_v3 = vpop.f32.mrb[3].mxu0  ;;  %v358_v4 = vsel %vm351_vm1, %v329_v63, 0.0 }
 0x2a0   :  { %359 = vadd.xlane.f32.xlu0 %v358_v4  ;;  %v540_v5 = vpop.f32.mrb[0].mxu1  ;;  %v324_v6 = vadd.f32 %v517_v48, %v323_v3  ;;  %v352_v12 = vsel %vm351_vm1, %v321_v1, 0.0 }
 0x2a1   :  { %v336_v7 = vpop.f32.mrb[1].mxu1  ;;  %v361_v8 = vsel %vm351_vm1, %v332_v2, 0.0  ;;  %v345_v15 = vadd.f32 %v540_v5, %v517_v48 }
 0x2a2   :  { %362 = vadd.xlane.f32.xlu1 %v361_v8  ;;  %v541_v9 = vpop.f32.mrb[2].mxu1  ;;  %v337_v10 = vadd.f32 %v517_v48, %v336_v7  ;;  %v355_v14 = vsel %vm351_vm1, %v324_v6, 0.0 }
 0x2a3   :  { %v339_v11 = vpop.f32.mrb[3].mxu1  ;;  %v348_v17 = vadd.f32 %v541_v9, %v517_v48  ;;  %v370_v19 = vsel %vm351_vm1, %v345_v15, 0.0 }
 0x2a4   :  { %353 = vadd.xlane.f32.xlu0 %v352_v12  ;;  %v340_v13 = vadd.f32 %v517_v48, %v339_v11  ;;  %v364_v16 = vsel %vm351_vm1, %v337_v10, 0.0 }
 0x2a5   :  { %v373_v22 = vsel %vm351_vm1, %v348_v17, 0.0 }
 0x2a6   :  { %356 = vadd.xlane.f32.xlu1 %v355_v14  ;;  %v367_v18 = vsel %vm351_vm1, %v340_v13, 0.0 }
 0x2a8   :  { %365 = vadd.xlane.f32.xlu0 %v364_v16 }
 0x2aa   :  { %368 = vadd.xlane.f32.xlu1 %v367_v18 }
 0x2ac   :  { %371 = vadd.xlane.f32.xlu0 %v370_v19  ;;  %v522_v19 = vld [vmem:[#allocation11] ss:$0 sm:$0xff] }
 0x2ae   :  { %374 = vadd.xlane.f32.xlu1 %v373_v22 }
 0x32d   :  { %v360_v23 = vpop.xlane.xlu0 %359 }
 0x32e   :  { %v379_v24 = vmul.f32 0.125, %v360_v23 }
 0x32f   :  { %v363_v25 = vpop.xlane.xlu1 %362 }
 0x330   :  { %v982_v26 = vsub.f32 %v329_v63, %v379_v24  ;;  %v380_v27 = vmul.f32 0.125, %v363_v25 }
 0x331   :  { %v354_v30 = vpop.xlane.xlu0 %353 }
 0x332   :  { %v984_v31 = vsub.f32 %v332_v2, %v380_v27  ;;  %v377_v32 = vmul.f32 0.125, %v354_v30  ;;  %v395_v33 = vmul.f32 %v982_v26, %v982_v26  ;;  %v523_v27 = vld [vmem:[#allocation13] ss:$0 sm:$0xff] }
 0x333   :  { %v357_v34 = vpop.xlane.xlu1 %356 }
 0x334   :  { %v988_v35 = vsub.f32 %v321_v1, %v377_v32  ;;  %v378_v36 = vmul.f32 0.125, %v357_v34  ;;  %v407_v37 = vsel %vm351_vm1, %v395_v33, 0.0  ;;  %v396_v40 = vmul.f32 %v984_v31, %v984_v31 }
 0x335   :  { %408 = vadd.xlane.f32.xlu0 %v407_v37  ;;  %v366_v41 = vpop.xlane.xlu0 %365 }
 0x336   :  { %v993_v20 = vsub.f32 %v324_v6, %v378_v36  ;;  %v381_v42 = vmul.f32 0.125, %v366_v41  ;;  %v410_v43 = vsel %vm351_vm1, %v396_v40, 0.0  ;;  %v393_v44 = vmul.f32 %v988_v35, %v988_v35 }
 0x337   :  { %411 = vadd.xlane.f32.xlu1 %v410_v43  ;;  %v369_v45 = vpop.xlane.xlu1 %368 }
 0x338   :  { %v998_v46 = vsub.f32 %v337_v10, %v381_v42  ;;  %v382_v47 = vmul.f32 0.125, %v369_v45  ;;  %v401_v28 = vsel %vm351_vm1, %v393_v44, 0.0  ;;  %v394_v50 = vmul.f32 %v993_v20, %v993_v20 }
 0x339   :  { %402 = vadd.xlane.f32.xlu0 %v401_v28  ;;  %v372_v21 = vpop.xlane.xlu0 %371 }
 0x33a   :  { %v1003_v51 = vsub.f32 %v340_v13, %v382_v47  ;;  %v383_v52 = vmul.f32 0.125, %v372_v21  ;;  %v404_v53 = vsel %vm351_vm1, %v394_v50, 0.0  ;;  %v397_v54 = vmul.f32 %v998_v46, %v998_v46 }
 0x33b   :  { %405 = vadd.xlane.f32.xlu1 %v404_v53  ;;  %v375_v55 = vpop.xlane.xlu1 %374 }
 0x33c   :  { %v1008_v29 = vsub.f32 %v345_v15, %v383_v52  ;;  %v384_v38 = vmul.f32 0.125, %v375_v55  ;;  %v413_v56 = vsel %vm351_vm1, %v397_v54, 0.0  ;;  %v398_v57 = vmul.f32 %v1003_v51, %v1003_v51 }
 0x33d   :  { %414 = vadd.xlane.f32.xlu0 %v413_v56 }
 0x33e   :  { %v1013_v58 = vsub.f32 %v348_v17, %v384_v38  ;;  %v416_v59 = vsel %vm351_vm1, %v398_v57, 0.0  ;;  %v399_v39 = vmul.f32 %v1008_v29, %v1008_v29 }
 0x33f   :  { %417 = vadd.xlane.f32.xlu1 %v416_v59 }
 0x340   :  { %v419_v60 = vsel %vm351_vm1, %v399_v39, 0.0  ;;  %v400_v61 = vmul.f32 %v1013_v58, %v1013_v58 }
 0x341   :  { %420 = vadd.xlane.f32.xlu0 %v419_v60 }
 0x342   :  { %v422_v48 = vsel %vm351_vm1, %v400_v61, 0.0 }
 0x343   :  { %423 = vadd.xlane.f32.xlu1 %v422_v48 }
 0x3c2   :  { %v409_v62 = vpop.xlane.xlu0 %408 }
 0x3c3   :  { %v427_v63 = vmul.f32 0.125, %v409_v62 }
 0x3c4   :  { %v412_v0 = vpop.xlane.xlu1 %411 }
 0x3c5   :  { %v435_v49 = vadd.f32 1e-05, %v427_v63  ;;  %v428_v1 = vmul.f32 0.125, %v412_v0 }
 0x3c6   :  { %v403_v2 = vpop.xlane.xlu0 %402 }
 0x3c7   :  { %572 = vrsqrt.f32 %v435_v49  ;;  %v436_v3 = vadd.f32 1e-05, %v428_v1  ;;  %v425_v4 = vmul.f32 0.125, %v403_v2 }
 0x3c8   :  { %v406_v5 = vpop.xlane.xlu1 %405 }
 0x3c9   :  { %574 = vrsqrt.f32 %v436_v3  ;;  %v433_v6 = vadd.f32 1e-05, %v425_v4  ;;  %v426_v7 = vmul.f32 0.125, %v406_v5 }
 0x3ca   :  { %v415_v8 = vpop.xlane.xlu0 %414 }
 0x3cb   :  { %576 = vrsqrt.f32 %v433_v6  ;;  %v434_v9 = vadd.f32 1e-05, %v426_v7  ;;  %v429_v10 = vmul.f32 0.125, %v415_v8 }
 0x3cc   :  { %v418_v11 = vpop.xlane.xlu1 %417 }
 0x3cd   :  { %578 = vrsqrt.f32 %v434_v9  ;;  %v437_v12 = vadd.f32 1e-05, %v429_v10  ;;  %v430_v13 = vmul.f32 0.125, %v418_v11 }
 0x3ce   :  { %v421_v14 = vpop.xlane.xlu0 %420 }
 0x3cf   :  { %580 = vrsqrt.f32 %v437_v12  ;;  %v438_v15 = vadd.f32 1e-05, %v430_v13  ;;  %v431_v16 = vmul.f32 0.125, %v421_v14 }
 0x3d0   :  { %v424_v17 = vpop.xlane.xlu1 %423 }
 0x3d1   :  { %v573_v18 = vpop.eup %572  ;;  %582 = vrsqrt.f32 %v438_v15  ;;  %v439_v22 = vadd.f32 1e-05, %v431_v16  ;;  %v432_v23 = vmul.f32 0.125, %v424_v17 }
 0x3d2   :  { %v451_v24 = vmul.f32 %v573_v18, %v982_v26 }
 0x3d3   :  { %v575_v25 = vpop.eup %574  ;;  %584 = vrsqrt.f32 %v439_v22  ;;  %v440_v30 = vadd.f32 1e-05, %v432_v23 }
 0x3d4   :  { %v466_v32 = vmul.f32 %v522_v19, %v451_v24  ;;  %v452_v33 = vmul.f32 %v575_v25, %v984_v31 }
 0x3d5   :  { %v577_v34 = vpop.eup %576  ;;  %586 = vrsqrt.f32 %v440_v30 }
 0x3d6   :  { %v481_v36 = vadd.f32 %v523_v27, %v466_v32  ;;  %v467_v37 = vmul.f32 %v522_v19, %v452_v33  ;;  %v449_v40 = vmul.f32 %v577_v34, %v988_v35 }
 0x3d7   :  { %v579_v41 = vpop.eup %578 }
 0x3d8   :  { %489 = vst.msk [vmem:[#allocation14 + $0x10] sm:$0xff] %vm351_vm1, %v481_v36  ;;  %v482_v42 = vadd.f32 %v523_v27, %v467_v37  ;;  %v464_v43 = vmul.f32 %v522_v19, %v449_v40  ;;  %v450_v26 = vmul.f32 %v579_v41, %v993_v20 }
 0x3d9   :  { %v581_v44 = vpop.eup %580 }
 0x3da   :  { %490 = vst.msk [vmem:[#allocation14 + $0x18] sm:$0xff] %vm351_vm1, %v482_v42  ;;  %v479_v45 = vadd.f32 %v523_v27, %v464_v43  ;;  %v465_v47 = vmul.f32 %v522_v19, %v450_v26  ;;  %v453_v31 = vmul.f32 %v581_v44, %v998_v46 }
 0x3db   :  { %v583_v28 = vpop.eup %582 }
 0x3dc   :  { %487 = vst.msk [vmem:[#allocation14] sm:$0xff] %vm351_vm1, %v479_v45  ;;  %v480_v50 = vadd.f32 %v523_v27, %v465_v47  ;;  %v468_v21 = vmul.f32 %v522_v19, %v453_v31  ;;  %v454_v35 = vmul.f32 %v583_v28, %v1003_v51 }
 0x3dd   :  { %v585_v52 = vpop.eup %584 }
 0x3de   :  { %488 = vst.msk [vmem:[#allocation14 + $0x8] sm:$0xff] %vm351_vm1, %v480_v50  ;;  %v483_v53 = vadd.f32 %v523_v27, %v468_v21  ;;  %v469_v54 = vmul.f32 %v522_v19, %v454_v35  ;;  %v455_v20 = vmul.f32 %v585_v52, %v1008_v29 }
 0x3df   :  { %v587_v55 = vpop.eup %586 }
 0x3e0   :  { %491 = vst.msk [vmem:[#allocation14 + $0x20] sm:$0xff] %vm351_vm1, %v483_v53  ;;  %v484_v38 = vadd.f32 %v523_v27, %v469_v54  ;;  %v470_v56 = vmul.f32 %v522_v19, %v455_v20  ;;  %v456_v46 = vmul.f32 %v587_v55, %v1013_v58 }
 0x3e2   :  { %492 = vst.msk [vmem:[#allocation14 + $0x28] sm:$0xff] %vm351_vm1, %v484_v38  ;;  %v485_v57 = vadd.f32 %v523_v27, %v470_v56  ;;  %v471_v51 = vmul.f32 %v522_v19, %v456_v46 }
 0x3e4   :  { %493 = vst.msk [vmem:[#allocation14 + $0x30] sm:$0xff] %vm351_vm1, %v485_v57  ;;  %v486_v59 = vadd.f32 %v523_v27, %v471_v51 }
 0x3e6   :  { %494 = vst.msk [vmem:[#allocation14 + $0x38] sm:$0xff] %vm351_vm1, %v486_v59 }
 0x3e7   :  { %753 = shalt.err (!%p750_p4)
}
 0x3e8   :  { %s754_s21 = scalar_lea.hbm %s1060_s7, 1024 }
 0x3e9   :  { %p755_p5 = scmp.ne.s32.totalorder %s1060_s7, %s754_s21  ;;  %p758_p6 = scmp.lt.u32.totalorder %s754_s21, %s1060_s7 }
 0x3eb   :  { %p760_p7 = pnand %p758_p6, %p755_p5 }
 0x3ed   :  { %763 = shalt.err (!%p760_p7)
}
 0x3ee   :  { %506 = dma.vmem_to_hbm [thread:$0]  %s501_s15, 1024, %s1060_s7, [#allocation4], %s777_s25, %s777_s25, %s778_s26  }
 0x3ef   :  { %772 = dma.done.wait [#allocation4], 1024  }
 0x3f0   :  { %773 = vsyncadd [#allocation4], 4294966272 }
 0x3f1   :  { %510 = vsyncpa [#allocation3], 1 }
 0x3f2   :  { %511 = vsyncpa [#allocation6], 1 }
 0x3f3   :  { %512 = vsyncpa [#allocation9], 1 }
 0x3f4   :  { %513 = vsyncpa [#allocation12], 1 }
 0x3f5   :  { %514 = vsyncpa [#allocation4], 1 }

</bundles_post_ra>
